<compile_context>
chip_gen: v5e
topology: v5e:2x2
jax: 0.10.0
libtpu: 0.0.40
codegen_flags: <defaults>
</compile_context>

<pallas_src>
import functools

import jax
import jax.numpy as jnp
from jax.experimental import pallas as pl
from jax.experimental.pallas import tpu as pltpu


def _ce_dice_partial_kernel(tgt_ref, logit_ref, out_ref, *,
                            ignore_index, n_rows_total, strip_rows,
                            need_row_mask):
    """One grid step:
         logits (1, C, BR, L) + targets (1, BR, L)
      -> (1, 1, 3, L) lane-partials: [ce_sum, n_valid, intersection]."""
    C = logit_ref.shape[1]
    BR = logit_ref.shape[2]
    L = logit_ref.shape[3]
    SR = strip_rows
    n_strips = BR // SR
    block_row0 = pl.program_id(0) * BR            # first global row of this block

    def strip(r0, row0):
        # r0  : row offset inside the block (static after unrolling)
        # row0: global row index of the strip's first row (for tail masking)
        tgt = tgt_ref[0, pl.ds(r0, SR), :]                      # (SR, L) ints
        if need_row_mask:
            row_idx = jax.lax.broadcasted_iota(jnp.int32, (SR, L), 0) + row0
            valid = (row_idx < n_rows_total) & (tgt != ignore_index)
        else:
            valid = tgt != ignore_index

        # Pass 1: per-pixel max over classes (pure elementwise VPU max).
        m = logit_ref[0, 0, pl.ds(r0, SR), :].astype(jnp.float32)
        for c in range(1, C):
            m = jnp.maximum(m, logit_ref[0, c, pl.ds(r0, SR), :].astype(jnp.float32))

        # Pass 2: exp-sum and the logit of the target class.
        s = jnp.zeros((SR, L), jnp.float32)
        tgt_logit = jnp.zeros((SR, L), jnp.float32)
        for c in range(C):
            x = logit_ref[0, c, pl.ds(r0, SR), :].astype(jnp.float32)
            s = s + jnp.exp(x - m)
            tgt_logit = jnp.where(tgt == c, x, tgt_logit)

        lse = m + jnp.log(s)                                      # logsumexp
        ce_px = jnp.where(valid, lse - tgt_logit, 0.0)            # per-pixel NLL
        inter_px = jnp.where(valid, jnp.exp(tgt_logit - lse), 0.0)  # softmax@target

        return (jnp.sum(ce_px, axis=0, keepdims=True),
                jnp.sum(valid.astype(jnp.float32), axis=0, keepdims=True),
                jnp.sum(inter_px, axis=0, keepdims=True))

    if n_strips == 1:
        ce_rows, val_rows, int_rows = strip(0, block_row0)
    else:
        def body(si, carry):
            r0 = pl.multiple_of(si * SR, SR)
            ce, va, it = strip(r0, block_row0 + si * SR)
            return (carry[0] + ce, carry[1] + va, carry[2] + it)
        init = (jnp.zeros((1, L), jnp.float32),
                jnp.zeros((1, L), jnp.float32),
                jnp.zeros((1, L), jnp.float32))
        ce_rows, val_rows, int_rows = jax.lax.fori_loop(
            0, n_strips, body, init, unroll=True)

    # Single stacked store (avoids three masked partial vst's).
    out_ref[...] = jnp.concatenate([ce_rows, val_rows, int_rows],
                                   axis=0).reshape(1, 1, 3, L)


def _vmem_capacity_bytes():
    try:
        return int(pltpu.get_tpu_info().vmem_capacity_bytes)
    except Exception:
        return 64 * 1024 * 1024        # conservative (v7x-sized) fallback


def _choose_block_rows(C, L, logit_itemsize, tgt_itemsize, n_rows, vmem_cap):
    """Pick the sublane-row block size BR (and strip size SR <= 64)."""
    lanes = ((L + 127) // 128) * 128                 # VMEM lane padding
    logit_row_bytes = C * lanes * logit_itemsize
    row_bytes = logit_row_bytes + lanes * tgt_itemsize
    target_bytes = 4 * 1024 * 1024                   # ~4 MiB of logits / step
    vmem_budget = vmem_cap // 4                      # double-buffered inputs
    br = min(max(1, target_bytes // logit_row_bytes),
             max(1, vmem_budget // (2 * row_bytes)))
    br = max(8, int(br))

    if n_rows <= 64:
        BR = n_rows                                  # full row axis, one strip
    elif br >= 64:
        BR = max(64, (min(br, n_rows) // 64) * 64)   # multiple of strip size
    else:
        BR = max(8, (br // 8) * 8)                   # VMEM-bound (huge C)
    SR = min(BR, 64)
    assert BR % SR == 0
    return BR, SR


def ce_dice_loss(logits_nchw, target_nhw, *, smooth=1.0, ignore_index=255):
    """CE_DiceLoss forward (weight=None, reduction='mean')."""
    N, C, H, W = logits_nchw.shape
    HW = H * W

    # Layout: never pad or rewrite the logits in HBM.
    if HW % 128 == 0:
        R, L = HW // 128, 128
        logits4 = logits_nchw.reshape(N, C, R, L)    # free (contiguous) reshape
        target3 = target_nhw.reshape(N, R, L)
    else:
        R, L = H, W                                  # use NCHW directly
        logits4 = logits_nchw
        target3 = target_nhw

    # Keep targets in a narrow int dtype when possible (they are tiny anyway).
    if target3.dtype.name not in ("int32", "uint32", "int16", "uint16", "uint8"):
        target3 = target3.astype(jnp.int32)

    vmem_cap = _vmem_capacity_bytes()
    BR, SR = _choose_block_rows(C, L, jnp.dtype(logits4.dtype).itemsize,
                                jnp.dtype(target3.dtype).itemsize, R, vmem_cap)
    nblk = pl.cdiv(R, BR)
    need_row_mask = (R % BR) != 0
    vmem_limit = int(max(32 * 1024 * 1024, vmem_cap // 2))

    # TODO(synk): the reference repo's DiceLoss conditionally rewrites
    # ignore_index pixels to target.min(); here ignored pixels get an all-zero
    # one-hot row (exact match whenever targets contain no ignore_index).

    kernel = functools.partial(
        _ce_dice_partial_kernel,
        ignore_index=int(ignore_index),
        n_rows_total=int(R),
        strip_rows=int(SR),
        need_row_mask=bool(need_row_mask),
    )

    partials = pl.pallas_call(
        kernel,
        out_shape=jax.ShapeDtypeStruct((nblk, N, 3, L), jnp.float32),
        grid_spec=pltpu.PrefetchScalarGridSpec(
            num_scalar_prefetch=0,
            grid=(nblk, N),                          # large axis leading (megacore)
            in_specs=[
                pl.BlockSpec((1, BR, L), lambda i, n: (n, i, 0)),       # targets
                pl.BlockSpec((1, C, BR, L), lambda i, n: (n, 0, i, 0)),  # logits
            ],
            out_specs=pl.BlockSpec((1, 1, 3, L), lambda i, n: (i, n, 0, 0)),
        ),
        compiler_params=pltpu.CompilerParams(
            dimension_semantics=("parallel", "parallel"),
            vmem_limit_bytes=vmem_limit,
        ),
    )(target3, logits4)

    # Tiny final combine in plain JAX (tree reduction of per-block partials).
    ce_sum = jnp.sum(partials[:, :, 0, :], dtype=jnp.float32)
    n_valid = jnp.sum(partials[:, :, 1, :], dtype=jnp.float32)
    inter = jnp.sum(partials[:, :, 2, :], dtype=jnp.float32)

    p_sum = jnp.float32(N * HW)   # softmax sums to 1 per pixel -> analytic
    t_sum = n_valid               # one-hot rows: 1 per valid pixel
    ce = ce_sum / n_valid         # NaN if every pixel is ignored (matches torch)
    dice = 1.0 - (2.0 * inter + smooth) / (p_sum + t_sum + smooth)
    return ce + dice


def _reference_loss(logits, target, *, smooth=1.0, ignore_index=255):
    """Plain-JAX reference matching the PyTorch module (no ignored pixels)."""
    N, C, H, W = logits.shape
    logits = logits.astype(jnp.float32)
    lse = jax.scipy.special.logsumexp(logits, axis=1)                       # (N,H,W)
    tgt_logit = jnp.take_along_axis(
        logits, target.astype(jnp.int32)[:, None], axis=1)[:, 0]            # (N,H,W)
    valid = (target != ignore_index).astype(jnp.float32)
    ce = jnp.sum((lse - tgt_logit) * valid) / jnp.sum(valid)
    p = jax.nn.softmax(logits, axis=1)
    onehot = jnp.transpose(jax.nn.one_hot(target, C, dtype=jnp.float32), (0, 3, 1, 2))
    inter = jnp.sum(p * onehot)
    dice = 1.0 - (2.0 * inter + smooth) / (jnp.sum(p) + jnp.sum(onehot) + smooth)
    return ce + dice


if __name__ == "__main__":
    key = jax.random.PRNGKey(0)

    # 1) Spec shape (aligned HW, single strip).
    k1, k2, key = jax.random.split(key, 3)
    N, C, H, W = 2, 4, 16, 16
    logits = jax.random.normal(k1, (N, C, H, W), dtype=jnp.float32)
    target = jax.random.randint(k2, (N, H, W), 0, C, dtype=jnp.int32)
    loss = jax.block_until_ready(ce_dice_loss(logits, target))
    ref = jax.block_until_ready(_reference_loss(logits, target))
    assert jnp.allclose(loss, ref, rtol=1e-3, atol=1e-3), (loss, ref)

    # 2) bf16 logits pass straight through (no wrapper upcast).
    loss_bf16 = jax.block_until_ready(
        ce_dice_loss(logits.astype(jnp.bfloat16), target))
    ref_bf16 = jax.block_until_ready(
        _reference_loss(logits.astype(jnp.bfloat16), target))
    assert jnp.allclose(loss_bf16, ref_bf16, rtol=5e-3, atol=5e-3), (loss_bf16, ref_bf16)

    # 3) HW not a lane multiple -> unpadded NCHW path (no HBM rewrite).
    k1, k2, key = jax.random.split(key, 3)
    logits_u = jax.random.normal(k1, (1, 3, 20, 20), dtype=jnp.float32)
    target_u = jax.random.randint(k2, (1, 20, 20), 0, 3, dtype=jnp.int32)
    loss_u = jax.block_until_ready(ce_dice_loss(logits_u, target_u))
    ref_u = jax.block_until_ready(_reference_loss(logits_u, target_u))
    assert jnp.allclose(loss_u, ref_u, rtol=1e-3, atol=1e-3), (loss_u, ref_u)

    # 4) Multi-strip block + partial tail block (row masking inside the kernel).
    k1, k2, key = jax.random.split(key, 3)
    logits_l = jax.random.normal(k1, (1, 3, 160, 128), dtype=jnp.float32)
    target_l = jax.random.randint(k2, (1, 160, 128), 0, 3, dtype=jnp.int32)
    loss_l = jax.block_until_ready(ce_dice_loss(logits_l, target_l))
    ref_l = jax.block_until_ready(_reference_loss(logits_l, target_l))
    assert jnp.allclose(loss_l, ref_l, rtol=1e-3, atol=1e-3), (loss_l, ref_l)

    print("KERNEL_OK")
</pallas_src>

<mosaic_0001>
module attributes {stable_mosaic.version = 11 : i64} {
  func.func @_ce_dice_partial_kernel(%arg0: i32, %arg1: i32, %arg2: memref<1x2x128xi32, #tpu.memory_space<vmem>>, %arg3: memref<1x4x2x128xf32, #tpu.memory_space<vmem>>, %arg4: memref<1x1x3x128xf32, #tpu.memory_space<vmem>>) attributes {dimension_semantics = [#tpu.dimension_semantics<parallel>, #tpu.dimension_semantics<parallel>], iteration_bounds = array<i64: 1, 2>, scalar_prefetch = 0 : i64, scratch_operands = 0 : i64, tpu.core_type = #tpu.core_type<tc>, window_params = [{transform_indices = @transform_0, window_bounds = array<i64: 1, 2, 128>}, {transform_indices = @transform_1, window_bounds = array<i64: 1, 4, 2, 128>}, {transform_indices = @transform_2, window_bounds = array<i64: 1, 1, 3, 128>}]} {
    %c0 = arith.constant 0 : index
    %c0_0 = arith.constant 0 : index
    %c0_1 = arith.constant 0 : index
    %0 = vector.load %arg2[%c0, %c0_0, %c0_1] : memref<1x2x128xi32, #tpu.memory_space<vmem>>, vector<1x2x128xi32>
    %1 = vector.shape_cast %0 : vector<1x2x128xi32> to vector<2x128xi32>
    %c255_i32 = arith.constant 255 : i32
    %2 = vector.broadcast %c255_i32 : i32 to vector<2x128xi32>
    %3 = arith.cmpi ne, %1, %2 : vector<2x128xi32>
    %c0_2 = arith.constant 0 : index
    %c0_3 = arith.constant 0 : index
    %c0_4 = arith.constant 0 : index
    %c0_5 = arith.constant 0 : index
    %4 = vector.load %arg3[%c0_2, %c0_3, %c0_4, %c0_5] : memref<1x4x2x128xf32, #tpu.memory_space<vmem>>, vector<1x1x2x128xf32>
    %5 = vector.shape_cast %4 : vector<1x1x2x128xf32> to vector<2x128xf32>
    %c0_6 = arith.constant 0 : index
    %c1 = arith.constant 1 : index
    %c0_7 = arith.constant 0 : index
    %c0_8 = arith.constant 0 : index
    %6 = vector.load %arg3[%c0_6, %c1, %c0_7, %c0_8] : memref<1x4x2x128xf32, #tpu.memory_space<vmem>>, vector<1x1x2x128xf32>
    %7 = vector.shape_cast %6 : vector<1x1x2x128xf32> to vector<2x128xf32>
    %8 = arith.maximumf %5, %7 : vector<2x128xf32>
    %c0_9 = arith.constant 0 : index
    %c2 = arith.constant 2 : index
    %c0_10 = arith.constant 0 : index
    %c0_11 = arith.constant 0 : index
    %9 = vector.load %arg3[%c0_9, %c2, %c0_10, %c0_11] : memref<1x4x2x128xf32, #tpu.memory_space<vmem>>, vector<1x1x2x128xf32>
    %10 = vector.shape_cast %9 : vector<1x1x2x128xf32> to vector<2x128xf32>
    %11 = arith.maximumf %8, %10 : vector<2x128xf32>
    %c0_12 = arith.constant 0 : index
    %c3 = arith.constant 3 : index
    %c0_13 = arith.constant 0 : index
    %c0_14 = arith.constant 0 : index
    %12 = vector.load %arg3[%c0_12, %c3, %c0_13, %c0_14] : memref<1x4x2x128xf32, #tpu.memory_space<vmem>>, vector<1x1x2x128xf32>
    %13 = vector.shape_cast %12 : vector<1x1x2x128xf32> to vector<2x128xf32>
    %14 = arith.maximumf %11, %13 : vector<2x128xf32>
    %cst = arith.constant 0.000000e+00 : f32
    %15 = vector.broadcast %cst : f32 to vector<2x128xf32>
    %cst_15 = arith.constant 0.000000e+00 : f32
    %16 = vector.broadcast %cst_15 : f32 to vector<2x128xf32>
    %c0_16 = arith.constant 0 : index
    %c0_17 = arith.constant 0 : index
    %c0_18 = arith.constant 0 : index
    %c0_19 = arith.constant 0 : index
    %17 = vector.load %arg3[%c0_16, %c0_17, %c0_18, %c0_19] : memref<1x4x2x128xf32, #tpu.memory_space<vmem>>, vector<1x1x2x128xf32>
    %18 = vector.shape_cast %17 : vector<1x1x2x128xf32> to vector<2x128xf32>
    %19 = arith.subf %18, %14 : vector<2x128xf32>
    %20 = math.exp %19 : vector<2x128xf32>
    %21 = arith.addf %15, %20 : vector<2x128xf32>
    %c0_i32 = arith.constant 0 : i32
    %22 = vector.broadcast %c0_i32 : i32 to vector<2x128xi32>
    %23 = arith.cmpi eq, %1, %22 : vector<2x128xi32>
    %24 = arith.select %23, %18, %16 : vector<2x128xi1>, vector<2x128xf32>
    %c0_20 = arith.constant 0 : index
    %c1_21 = arith.constant 1 : index
    %c0_22 = arith.constant 0 : index
    %c0_23 = arith.constant 0 : index
    %25 = vector.load %arg3[%c0_20, %c1_21, %c0_22, %c0_23] : memref<1x4x2x128xf32, #tpu.memory_space<vmem>>, vector<1x1x2x128xf32>
    %26 = vector.shape_cast %25 : vector<1x1x2x128xf32> to vector<2x128xf32>
    %27 = arith.subf %26, %14 : vector<2x128xf32>
    %28 = math.exp %27 : vector<2x128xf32>
    %29 = arith.addf %21, %28 : vector<2x128xf32>
    %c1_i32 = arith.constant 1 : i32
    %30 = vector.broadcast %c1_i32 : i32 to vector<2x128xi32>
    %31 = arith.cmpi eq, %1, %30 : vector<2x128xi32>
    %32 = arith.select %31, %26, %24 : vector<2x128xi1>, vector<2x128xf32>
    %c0_24 = arith.constant 0 : index
    %c2_25 = arith.constant 2 : index
    %c0_26 = arith.constant 0 : index
    %c0_27 = arith.constant 0 : index
    %33 = vector.load %arg3[%c0_24, %c2_25, %c0_26, %c0_27] : memref<1x4x2x128xf32, #tpu.memory_space<vmem>>, vector<1x1x2x128xf32>
    %34 = vector.shape_cast %33 : vector<1x1x2x128xf32> to vector<2x128xf32>
    %35 = arith.subf %34, %14 : vector<2x128xf32>
    %36 = math.exp %35 : vector<2x128xf32>
    %37 = arith.addf %29, %36 : vector<2x128xf32>
    %c2_i32 = arith.constant 2 : i32
    %38 = vector.broadcast %c2_i32 : i32 to vector<2x128xi32>
    %39 = arith.cmpi eq, %1, %38 : vector<2x128xi32>
    %40 = arith.select %39, %34, %32 : vector<2x128xi1>, vector<2x128xf32>
    %c0_28 = arith.constant 0 : index
    %c3_29 = arith.constant 3 : index
    %c0_30 = arith.constant 0 : index
    %c0_31 = arith.constant 0 : index
    %41 = vector.load %arg3[%c0_28, %c3_29, %c0_30, %c0_31] : memref<1x4x2x128xf32, #tpu.memory_space<vmem>>, vector<1x1x2x128xf32>
    %42 = vector.shape_cast %41 : vector<1x1x2x128xf32> to vector<2x128xf32>
    %43 = arith.subf %42, %14 : vector<2x128xf32>
    %44 = math.exp %43 : vector<2x128xf32>
    %45 = arith.addf %37, %44 : vector<2x128xf32>
    %c3_i32 = arith.constant 3 : i32
    %46 = vector.broadcast %c3_i32 : i32 to vector<2x128xi32>
    %47 = arith.cmpi eq, %1, %46 : vector<2x128xi32>
    %48 = arith.select %47, %42, %40 : vector<2x128xi1>, vector<2x128xf32>
    %49 = math.log %45 : vector<2x128xf32>
    %50 = arith.addf %14, %49 : vector<2x128xf32>
    %51 = arith.subf %50, %48 : vector<2x128xf32>
    %cst_32 = arith.constant 0.000000e+00 : f32
    %52 = vector.broadcast %cst_32 : f32 to vector<2x128xf32>
    %53 = arith.select %3, %51, %52 : vector<2x128xi1>, vector<2x128xf32>
    %54 = arith.subf %48, %50 : vector<2x128xf32>
    %55 = math.exp %54 : vector<2x128xf32>
    %cst_33 = arith.constant 0.000000e+00 : f32
    %56 = vector.broadcast %cst_33 : f32 to vector<2x128xf32>
    %57 = arith.select %3, %55, %56 : vector<2x128xi1>, vector<2x128xf32>
    %cst_34 = arith.constant dense<0.000000e+00> : vector<128xf32>
    %58 = vector.multi_reduction <add>, %53, %cst_34 [0] : vector<2x128xf32> to vector<128xf32>
    %59 = vector.shape_cast %58 : vector<128xf32> to vector<1x128xf32>
    %60 = arith.extui %3 : vector<2x128xi1> to vector<2x128xi32>
    %61 = arith.sitofp %60 : vector<2x128xi32> to vector<2x128xf32>
    %cst_35 = arith.constant dense<0.000000e+00> : vector<128xf32>
    %62 = vector.multi_reduction <add>, %61, %cst_35 [0] : vector<2x128xf32> to vector<128xf32>
    %63 = vector.shape_cast %62 : vector<128xf32> to vector<1x128xf32>
    %cst_36 = arith.constant dense<0.000000e+00> : vector<128xf32>
    %64 = vector.multi_reduction <add>, %57, %cst_36 [0] : vector<2x128xf32> to vector<128xf32>
    %65 = vector.shape_cast %64 : vector<128xf32> to vector<1x128xf32>
    %66 = tpu.concatenate %59, %63, %65 in 0 : vector<1x128xf32>, vector<1x128xf32>, vector<1x128xf32> -> vector<3x128xf32>
    %67 = vector.shape_cast %66 : vector<3x128xf32> to vector<1x1x3x128xf32>
    %c0_37 = arith.constant 0 : index
    %c0_38 = arith.constant 0 : index
    %c0_39 = arith.constant 0 : index
    %c0_40 = arith.constant 0 : index
    %68 = vector.load %arg4[%c0_37, %c0_38, %c0_39, %c0_40] : memref<1x1x3x128xf32, #tpu.memory_space<vmem>>, vector<1x1x3x128xf32>
    tpu.vector_store %arg4[%c0_37, %c0_38, %c0_39, %c0_40], %67 {strides = array<i32>} : memref<1x1x3x128xf32, #tpu.memory_space<vmem>>, vector<1x1x3x128xf32>,
    return
  }
  func.func @transform_0(%arg0: i32, %arg1: i32) -> (i32, i32, i32) {
    %c0_i32 = arith.constant 0 : i32
    %c0_i32_0 = arith.constant 0 : i32
    return %arg1, %arg0, %c0_i32 : i32, i32, i32
  }
  func.func @transform_1(%arg0: i32, %arg1: i32) -> (i32, i32, i32, i32) {
    %c0_i32 = arith.constant 0 : i32
    %c0_i32_0 = arith.constant 0 : i32
    %c0_i32_1 = arith.constant 0 : i32
    return %arg1, %c0_i32, %arg0, %c0_i32_0 : i32, i32, i32, i32
  }
  func.func @transform_2(%arg0: i32, %arg1: i32) -> (i32, i32, i32, i32) {
    %c0_i32 = arith.constant 0 : i32
    %c0_i32_0 = arith.constant 0 : i32
    %c0_i32_1 = arith.constant 0 : i32
    return %arg0, %arg1, %c0_i32, %c0_i32_0 : i32, i32, i32, i32
  }
}

</mosaic_0001>

<bundles_post_ra>
// kernel: tpu_custom_call.1
= control target key start
LH: loop header
LB: loop body
LE: loop exit
PB: predicated region body
PF: predicated region fallthrough
CT: control target
= control target key end

     0   :  { %7 = vsyncpa [#allocation3], 0  ;;  %s765_s0 = inlined_call_operand.hbm [shape: s32[2,2,128], index: 0, kind: input, shape index: {}]   ;;  %s766_s1 = inlined_call_operand.hbm [shape: f32[2,4,2,128], index: 1, kind: input, shape index: {}]   ;;  %s767_s2 = inlined_call_operand.vmem [shape: f32[1,2,3,128], index: 2, kind: output, shape index: {}]  }
   0x1   :  { %9 = vsyncpa [#allocation3 + $0x1], 0 }
   0x2   :  { %10 = vsyncpa [#allocation5], 0 }
   0x3   :  { %12 = vsyncpa [#allocation5 + $0x1], 0  ;;  %s648_s9 = smov 0   ;;  %s650_s10 = smov 0  }
   0x4   :  { %s652_s11 = smov 0   ;;  %s654_s12 = smov 0  }
   0x5   :  { %s656_s13 = smov 0   ;;  %s658_s14 = smov 0  }
   0x6 LB: > { %s419_s15 = sadd.s32 4294967295, %s628_s14   ;;  %s27_s16 = sadd.s32 1, %s624_s13  ;;  %s628_s14 = sphi %s658_s14, %s18_s14   ;;  %s624_s13 = sphi %s656_s13, %s775_s13   ;;  %s620_s12 = sphi %s654_s12, %s774_s12   ;;  %s616_s11 = sphi %s652_s11, %s773_s11   ;;  %s612_s10 = sphi %s650_s10, %s772_s10   ;;  %s608_s9 = sphi %s648_s9, %s771_s9  }
   0x7   : > { %p28_p0 = scmp.ge.s32.totalorder %s27_s16, 2  ;;  %s39_s17 = sadd.s32 1, %s616_s11 }
   0x8   : > { %p46_p1 = scmp.ne.s32.totalorder %s616_s11, %s612_s10  ;;  %p47_p2 = scmp.eq.s32.totalorder %s628_s14, 0 }
   0x9   : > { %s777_s16 = smov (%p28_p0, %s27_s16), 0  ;;  %p52_p4 = scmp.ne.s32.totalorder %s612_s10, %s608_s9 }
   0xa   : > { %p684_p3 = por %p47_p2, %p46_p1  ;;  %s34_s19 = ssub.s32 %s624_s13, %s777_s16 }
   0xb   : > { %p53_p5 = scmp.eq.s32.totalorder %s419_s15, 0  ;;  %p37_p6 = scmp.eq.s32.totalorder %s34_s19, 0 }
   0xc   : > { %p450_p8 = scmp.lt.s32.totalorder %s628_s14, 2  ;;  %s700_s22 = sand.u32 1, %s616_s11  }
   0xd   : > { %p691_p7 = por %p53_p5, %p52_p4  ;;  %s424_s23 = sshll.u32 %s624_s13, 1 }
   0xe   : > { %s697_s21 = scalar_select %p37_p6, %s616_s11, %s39_s17  }
   0xf   : > { %s423_s24 = sshll.u32 %s700_s22, 1  ;;  %s141_s27 = scalar_lea.hbm %s765_s0, %s424_s23 }
  0x10   : > { %s143_s28 = sshll.u32 %s141_s27, 4  ;;  %s136_s29 = scalar_lea.vmem [#allocation2], %s423_s24  ;;  %s144_s28 = int_to_ptr.hbm [resolvable:$true] %s143_s28 }
  0x11   : > { %s145_s30 = sshll.u32 %s136_s29, 4  ;;  %p709_p9 = pnand %p450_p8, %p684_p3  ;;  %s146_s30 = int_to_ptr.vmem [resolvable:$true] %s145_s30 }
  0x12   : > { %p428_p10 = scmp.ge.s32.totalorder %s628_s14, 1  ;;  %p173_p11 = scmp.lt.s32.totalorder %s628_s14, 3 }
  0x13   : > { %s425_s4 = sshll.u32 %s700_s22, 3  ;;  %s133_s5 = scalar_lea.sflag [#allocation3], %s700_s22 }
  0x14   : > { %446 = dma.hbm_to_vmem [thread:$0]  (!%p709_p9), %s144_s28, 32, %s146_s30, %s133_s5  }
  0x15   : > { %p174_p12 = pnand %p428_p10, %p173_p11  ;;  %s438_s6 = sshll.u32 %s624_s13, 3 }
  0x16   : > { %s156_s7 = scalar_lea.vmem [#allocation4], %s425_s4  ;;  %s162_s17 = scalar_lea.hbm %s766_s1, %s438_s6 }
  0x17   : > { %s165_s8 = sshll.u32 %s156_s7, 4  ;;  %s163_s18 = sshll.u32 %s162_s17, 4  ;;  %s166_s8 = int_to_ptr.vmem [resolvable:$true] %s165_s8  ;;  %s164_s18 = int_to_ptr.hbm [resolvable:$true] %s163_s18 }
  0x18   : > { %s153_s19 = scalar_lea.sflag [#allocation5], %s700_s22  ;;  %s630_s23 = smov 32  }
  0x19   : > { %s631_s24 = smov 2   ;;  %177 = sbr.rel (%p174_p12) target bundleno = 97 (0x61), region = 28 }
  0x1a   : > { %449 = dma.hbm_to_vmem [thread:$0]  (!%p709_p9), %s164_s18, 128, %s166_s8, %s153_s19, %s630_s23, %s630_s23, %s631_s24  }
  0x1b   : > { %s179_s25 = sand.u32 (!%p174_p12), 1, %s612_s10  }
  0x1c   : > { %s429_s26 = sshll.u32 (!%p174_p12), %s179_s25, 1  ;;  %s180_s27 = scalar_lea.sflag (!%p174_p12), [#allocation3], %s179_s25 }
  0x1d   : > { %s183_s28 = scalar_lea.vmem (!%p174_p12), [#allocation2], %s429_s26 }
  0x1e   : > { %599 = dma.done.wait (%p691_p7), %s180_s27, 32  }
  0x1f   : > { %601 = vsyncadd (%p691_p7), %s180_s27, 4294967264  ;;  %s430_s29 = sshll.u32 %s179_s25, 3  ;;  %s190_s30 = scalar_lea.sflag [#allocation5], %s179_s25 }
  0x20   : > { %s193_s22 = scalar_lea.vmem [#allocation4], %s430_s29 }
  0x21   : > { %603 = dma.done.wait (%p691_p7), %s190_s30, 128  }
  0x22   : > { %605 = vsyncadd (%p691_p7), %s190_s30, 4294967168  ;;  %v233_v0 = vld [vmem:[%s193_s22] sm:$0x3]  ;;  %v432_v1 = vld [vmem:[%s193_s22 + $0x2] sm:$0x3]  ;;  %vm276_vm4 = vcmask 1041408  }
  0x23   : > { %v236_v2 = vmax.f32 %v233_v0, %v432_v1  ;;  %v433_v3 = vld [vmem:[%s193_s22 + $0x4] sm:$0x3]  ;;  %v434_v4 = vld [vmem:[%s193_s22 + $0x6] sm:$0x3]  ;;  %v231_v17 = vld [vmem:[%s183_s28] sm:$0x3] }
  0x24   : > { %vm247_vm0 = vcmp.eq.s32.totalorder %v231_v17, 0  ;;  %vm253_vm1 = vcmp.eq.s32.totalorder %v231_v17, 1  ;;  %vm232_vm2 = vcmp.ne.s32.totalorder %v231_v17, 255  ;;  %vm259_vm3 = vcmp.eq.s32.totalorder %v231_v17, 2  ;;  %p225_p13 = scmp.lt.s32.totalorder %s620_s12, 1 }
  0x25   : > { %v239_v5 = vmax.f32 %v236_v2, %v433_v3  ;;  %v248_v23 = vsel %vm247_vm0, %v233_v0, 0.0  ;;  %v632_v25 = vmov 0.0   ;;  %vm265_vm5 = vcmp.eq.s32.totalorder %v231_v17, 3 }
  0x26   : > { %v254_v24 = vsel %vm253_vm1, %v432_v1, %v248_v23  ;;  %v435_v26 = vsel %vm232_vm2, 1.0, %v632_v25  ;;  %s779_s12 = smov (!%p225_p13, %s620_s12), 1  ;;  %vm300_vm6 = vcmask 1040384  }
  0x27   : > { %v242_v6 = vmax.f32 %v239_v5, %v434_v4  ;;  %v260_v27 = vsel %vm259_vm3, %v433_v3, %v254_v24  ;;  %v286_v29 = vsel %vm276_vm4, %v435_v26, 0.0  ;;  %s431_s20 = sshll.u32 %s779_s12, 2 }
  0x28   : > { %v266_v31 = vsel %vm265_vm5, %v434_v4, %v260_v27  ;;  %v287_v33 = vrot.slane %v286_v29, 4  ;;  %s230_s5 = scalar_lea.vmem %s767_s2, %s431_s20 }
  0x29   : > { %v243_v7 = vsub.f32 %v233_v0, %v242_v6  ;;  %v249_v8 = vsub.f32 %v432_v1, %v242_v6  ;;  %v255_v9 = vsub.f32 %v433_v3, %v242_v6  ;;  %v261_v10 = vsub.f32 %v434_v4, %v242_v6 }
  0x2a   : > { %v288_v38 = vadd.f32 %v287_v33, %v286_v29 }
  0x2b   : > { %v244_v11 = vmul.f32 1.442695, %v243_v7  ;;  %v250_v12 = vmul.f32 1.442695, %v249_v8  ;;  %v256_v13 = vmul.f32 1.442695, %v255_v9 }
  0x2c   : > { %v262_v14 = vmul.f32 1.442695, %v261_v10  ;;  %v289_v42 = vrot.slane %v288_v38, 2 }
  0x2d   : > { %502 = vpow2.f32 %v244_v11 }
  0x2e   : > { %504 = vpow2.f32 %v250_v12  ;;  %v290_v46 = vadd.f32 %v289_v42, %v288_v38 }
  0x2f   : > { %506 = vpow2.f32 %v256_v13 }
  0x30   : > { %508 = vpow2.f32 %v262_v14  ;;  %v291_v51 = vrot.slane %v290_v46, 1 }
  0x32   : > { %v292_v55 = vadd.f32 %v291_v51, %v290_v46 }
  0x33   : > { %v503_v15 = vpop.eup %502 }
  0x34   : > { %v505_v16 = vpop.eup %504 }
  0x35   : > { %v507_v18 = vpop.eup %506  ;;  %v252_v19 = vadd.f32 %v505_v16, %v503_v15 }
  0x36   : > { %v509_v20 = vpop.eup %508 }
  0x37   : > { %v258_v21 = vadd.f32 %v507_v18, %v252_v19 }
  0x39   : > { %v264_v22 = vadd.f32 %v509_v20, %v258_v21 }
  0x3b   : > { %510 = vlog2.f32 %v264_v22 }
  0x41   : > { %v511_v28 = vpop.eup %510 }
  0x42   : > { %v268_v30 = vmul.f32 0.6931472, %v511_v28 }
  0x44   : > { %v269_v32 = vadd.f32 %v268_v30, %v242_v6 }
  0x46   : > { %v270_v34 = vsub.f32 %v269_v32, %v266_v31  ;;  %v272_v35 = vsub.f32 %v266_v31, %v269_v32 }
  0x48   : > { %v271_v36 = vsel %vm232_vm2, %v270_v34, 0.0  ;;  %v273_v37 = vmul.f32 1.442695, %v272_v35 }
  0x49   : > { %v277_v39 = vsel %vm276_vm4, %v271_v36, 0.0 }
  0x4a   : > { %512 = vpow2.f32 %v273_v37  ;;  %v278_v40 = vrot.slane %v277_v39, 4 }
  0x4c   : > { %v279_v41 = vadd.f32 %v278_v40, %v277_v39 }
  0x4e   : > { %v280_v43 = vrot.slane %v279_v41, 2 }
  0x50   : > { %v513_v44 = vpop.eup %512  ;;  %v281_v45 = vadd.f32 %v280_v43, %v279_v41 }
  0x51   : > { %v275_v47 = vsel %vm232_vm2, %v513_v44, 0.0 }
  0x52   : > { %v293_v48 = vsel %vm276_vm4, %v275_v47, 0.0  ;;  %v282_v50 = vrot.slane %v281_v45, 1 }
  0x53   : > { %v294_v49 = vrot.slane %v293_v48, 4 }
  0x54   : > { %v283_v54 = vadd.f32 %v282_v50, %v281_v45 }
  0x55   : > { %v295_v52 = vadd.f32 %v294_v49, %v293_v48 }
  0x56   : > { %v301_v58 = vsel %vm300_vm6, %v283_v54, %v292_v55 }
  0x57   : > { %v296_v53 = vrot.slane %v295_v52, 2 }
  0x59   : > { %v297_v56 = vadd.f32 %v296_v53, %v295_v52 }
  0x5b   : > { %v298_v57 = vrot.slane %v297_v56, 1 }
  0x5d   : > { %v299_v59 = vadd.f32 %v298_v57, %v297_v56 }
  0x5f   : > { %v302_v60 = vsel %vm276_vm4, %v301_v58, %v299_v59 }
  0x60   : > { %303 = vst [vmem:[%s230_s5] sm:$0x7] %v302_v60 }
  0x61 PF: > { %s18_s14 = sadd.s32 1, %s628_s14   ;;  %s771_s9 = smov %s612_s10 }
  0x62   : > { %p15_p0 = scmp.ge.s32.totalorder %s18_s14, 4   ;;  %s772_s10 = smov %s616_s11 }
  0x63   : > { %s773_s11 = smov %s697_s21  ;;  %s774_s12 = smov %s624_s13 }
  0x64   : > { %s775_s13 = smov %s777_s16  ;;  %17 = sbr.rel (!%p15_p0) target bundleno = 6 (0x6), region = 84 }
  0x69   :  { %331 = vsyncpa [#allocation3], 1 }
  0x6a   :  { %333 = vsyncpa [#allocation3 + $0x1], 1 }
  0x6b   :  { %334 = vsyncpa [#allocation5], 1 }
  0x6c   :  { %336 = vsyncpa [#allocation5 + $0x1], 1 }

</bundles_post_ra>
